<compile_context>
chip_gen: v7x
topology: tpu7x:2x2x1
jax: 0.10.0
libtpu: 0.0.40
codegen_flags: <defaults>
</compile_context>

<pallas_src>
import jax
import jax.numpy as jnp
from jax import lax
from jax.experimental import pallas as pl
from jax.experimental.pallas import tpu as pltpu


# ----------------------------------------------------------------------------
# Pallas kernel
# ----------------------------------------------------------------------------
def _lstm_skeleton_kernel(feats_ref,   # VMEM (T*Bp, F) bf16  masked, time-major
                          len_ref,     # VMEM (Bp, 1) int32
                          enc_w_ref,   # VMEM (F, Hin) bf16
                          enc_b_ref,   # VMEM (1, Hin) f32
                          w_ih_ref,    # VMEM (Hin, 4H) bf16  (i,f,g,o; g cols x2)
                          w_hh_ref,    # VMEM (H, 4H) bf16    (g cols x2)
                          bias_ref,    # VMEM (1, 4H) f32     (b_ih+b_hh; g slice x2)
                          out_ref):    # VMEM (Bp, H) f32
    Bp, H = out_ref.shape
    T = feats_ref.shape[0] // Bp
    G = 4 * H

    # --- encoder: one batched Linear + ReLU over every (b, t) row ------------
    enc = jnp.dot(feats_ref[...], enc_w_ref[...],
                  preferred_element_type=jnp.float32) + enc_b_ref[...]
    enc = jnp.maximum(enc, 0.0)                               # (T*Bp, Hin) f32

    # --- hoisted input projection: gates_x for ALL timesteps, one matmul -----
    # Kept as a register/VMEM-resident value (no scratch round-trip).
    gx_all = (jnp.dot(enc.astype(jnp.bfloat16), w_ih_ref[...],
                      preferred_element_type=jnp.float32)
              + bias_ref[...])                                # (T*Bp, 4H) f32

    w_hh = w_hh_ref[...]                                      # (H, 4H) bf16
    lengths = len_ref[...]                                    # (Bp, 1) int32

    # hoisted loop invariants (JAX does not CSE broadcast_in_dim)
    len_b = jnp.broadcast_to(lengths, (Bp, H))                # (Bp, H) int32
    lane = lax.broadcasted_iota(jnp.int32, (Bp, G), 1)
    is_g_lane = (lane >= 2 * H) & (lane < 3 * H)              # tanh (g) quadrant
    g_mul = jnp.where(is_g_lane, 2.0, 1.0)                    # tanh = 2*sig(2x)-1
    g_add = jnp.where(is_g_lane, -1.0, 0.0)

    h = jnp.zeros((Bp, H), jnp.float32)
    c = jnp.zeros((Bp, H), jnp.float32)
    acc = jnp.zeros((Bp, H), jnp.float32)

    # --- batched, fully-unrolled recurrence (T is static & small) ------------
    # Only h @ w_hh (bf16 operands, f32 acc) remains on the serial per-step
    # path; gx slices are static and vreg-aligned (Bp multiple of 8, G = 128).
    for t in range(T):
        gx = gx_all[t * Bp:(t + 1) * Bp, :]                   # (Bp, 4H), no copy
        gates = gx + jnp.dot(h.astype(jnp.bfloat16), w_hh,
                             preferred_element_type=jnp.float32)
        # one full-width sigmoid (EUP) + one VPU FMA recovers tanh on g lanes
        s = jax.nn.sigmoid(gates)
        act = s * g_mul + g_add
        i_g = act[:, 0:H]
        f_g = act[:, H:2 * H]
        g_g = act[:, 2 * H:3 * H]
        o_g = act[:, 3 * H:4 * H]
        c_new = f_g * c + i_g * g_g
        h_new = o_g * jnp.tanh(c_new)
        # packed-sequence semantics: freeze state / stop accumulating past len
        m = t < len_b                                         # (Bp, H) bool
        h = jnp.where(m, h_new, h)
        c = jnp.where(m, c_new, c)
        acc = acc + jnp.where(m, h_new, 0.0)

    # --- 'sum' pooling: sum over valid timesteps / length, one dense store ---
    out_ref[...] = acc / lengths.astype(jnp.float32)


# ----------------------------------------------------------------------------
# Wrapper (layout glue + pallas_call)
# ----------------------------------------------------------------------------
def lstm_skeleton_forward(features, lengths, params, *, conf_threshold=0.5):
    """features: (B, T, J, 3) f32, lengths: (B,) int32 (each >= 1) -> (B, H)."""
    B, T, J, _ = features.shape
    enc_w, enc_b, w_ih, w_hh, bias = params
    F = 2 * J
    H = w_hh.shape[0]
    Bp = ((B + 7) // 8) * 8                                   # pad batch to sublane multiple

    # confidence thresholding folded into the packing step (fuses into the XLA
    # pack that exists anyway); bf16 activations halve kernel input bytes.
    conf_mask = (features[..., 2] > conf_threshold).astype(jnp.float32)   # (B,T,J)
    pos = jnp.stack([features[..., 0] * conf_mask,
                     features[..., 1] * conf_mask], axis=3)               # (B,T,J,2)
    feats = pos.reshape(B, T, F).astype(jnp.float32)          # interleaved [x0,y0,...]

    feats = jnp.pad(feats, ((0, Bp - B), (0, 0), (0, 0)))
    len_p = jnp.concatenate([lengths.astype(jnp.int32),
                             jnp.ones((Bp - B,), jnp.int32)]).reshape(Bp, 1)
    # time-major packing: row = t*Bp + b, so step t reads a contiguous block.
    feats_tb = jnp.transpose(feats, (1, 0, 2)).reshape(T * Bp, F).astype(jnp.bfloat16)

    # tanh(x) = 2*sigmoid(2x) - 1 fold: pre-scale the g-gate columns by 2
    # (kernel-only copies; exact in bf16). Gate order i, f, g, o.
    gsl = slice(2 * H, 3 * H)
    w_ih_k = w_ih.at[:, gsl].multiply(2.0).astype(jnp.bfloat16)
    w_hh_k = w_hh.at[:, gsl].multiply(2.0).astype(jnp.bfloat16)
    bias_k = bias.at[gsl].multiply(2.0)

    out = pl.pallas_call(
        _lstm_skeleton_kernel,
        out_shape=jax.ShapeDtypeStruct((Bp, H), jnp.float32),
        in_specs=[
            pl.BlockSpec(memory_space=pltpu.MemorySpace.VMEM),   # feats (time-major)
            pl.BlockSpec(memory_space=pltpu.MemorySpace.VMEM),   # lengths (Bp,1)
            pl.BlockSpec(memory_space=pltpu.MemorySpace.VMEM),   # enc_w
            pl.BlockSpec(memory_space=pltpu.MemorySpace.VMEM),   # enc_b
            pl.BlockSpec(memory_space=pltpu.MemorySpace.VMEM),   # w_ih (g x2)
            pl.BlockSpec(memory_space=pltpu.MemorySpace.VMEM),   # w_hh (g x2)
            pl.BlockSpec(memory_space=pltpu.MemorySpace.VMEM),   # bias (g x2)
        ],
        out_specs=pl.BlockSpec(memory_space=pltpu.MemorySpace.VMEM),
    )(feats_tb, len_p, enc_w.astype(jnp.bfloat16), enc_b.reshape(1, -1),
      w_ih_k, w_hh_k, bias_k.reshape(1, -1))
    return out[:B]


# ----------------------------------------------------------------------------
# Pure-JAX reference (for the sanity check) -- f32 throughout
# ----------------------------------------------------------------------------
def reference_forward(features, lengths, params, *, conf_threshold=0.5):
    B, T, J, _ = features.shape
    enc_w, enc_b, w_ih, w_hh, bias = params
    H = w_hh.shape[0]
    conf = (features[..., 2] > conf_threshold).astype(jnp.float32)
    pos = jnp.stack([features[..., 0] * conf, features[..., 1] * conf], axis=3)
    feats = pos.reshape(B, T, -1)
    enc = jnp.maximum(feats @ enc_w + enc_b, 0.0)             # (B, T, Hin)

    def step(carry, inp):
        h, c = carry
        x_t, t = inp
        gates = x_t @ w_ih + h @ w_hh + bias
        i = jax.nn.sigmoid(gates[:, :H])
        f = jax.nn.sigmoid(gates[:, H:2 * H])
        g = jnp.tanh(gates[:, 2 * H:3 * H])
        o = jax.nn.sigmoid(gates[:, 3 * H:])
        c_new = f * c + i * g
        h_new = o * jnp.tanh(c_new)
        valid = (t < lengths)[:, None].astype(jnp.float32)
        h = valid * h_new + (1.0 - valid) * h
        c = valid * c_new + (1.0 - valid) * c
        return (h, c), valid * h_new

    h0 = jnp.zeros((B, H), jnp.float32)
    c0 = jnp.zeros((B, H), jnp.float32)
    (_, _), outs = lax.scan(step, (h0, c0),
                            (jnp.transpose(enc, (1, 0, 2)), jnp.arange(T)))
    return outs.sum(0) / lengths[:, None].astype(jnp.float32)


# ----------------------------------------------------------------------------
# Deterministic parameter init (matches the nn.Module shapes, incl. init_lstm)
# ----------------------------------------------------------------------------
def init_params(key, num_input, num_input_lstm, hidden_size):
    k = jax.random.split(key, 6)
    H = hidden_size
    enc_w = 0.1 * jax.random.normal(k[0], (num_input, num_input_lstm), jnp.float32)
    enc_b = 0.1 * jax.random.normal(k[1], (num_input_lstm,), jnp.float32)
    w_ih = 0.1 * jax.random.normal(k[2], (num_input_lstm, 4 * H), jnp.float32)
    w_hh = 0.1 * jax.random.normal(k[3], (H, 4 * H), jnp.float32)
    b_ih = 0.1 * jax.random.normal(k[4], (4 * H,), jnp.float32)
    b_hh = 0.1 * jax.random.normal(k[5], (4 * H,), jnp.float32)
    # init_lstm: forget-gate slice [H:2H] of each bias filled with 1.0
    b_ih = b_ih.at[H:2 * H].set(1.0)
    b_hh = b_hh.at[H:2 * H].set(1.0)
    bias = b_ih + b_hh
    return enc_w, enc_b, w_ih, w_hh, bias


# TODO(synk): train-mode dropout, bidirectional=True and num_layers>1 variants
# are not instantiated; forward is the eval-mode single-layer unidirectional path.

if __name__ == "__main__":
    B, T, J = 2, 8, 8
    num_input = 2 * J          # 16
    num_input_lstm = 32
    hidden_size = 32
    conf_threshold = 0.5

    key = jax.random.PRNGKey(0)
    k_feat, k_conf, k_par = jax.random.split(key, 3)
    xy = jax.random.normal(k_feat, (B, T, J, 2), jnp.float32)
    conf = jax.random.uniform(k_conf, (B, T, J, 1), jnp.float32)
    features = jnp.concatenate([xy, conf], axis=-1)           # (B, T, J, 3)
    lengths = jnp.array([8, 5], jnp.int32)                    # descending (pack_padded)

    params = init_params(k_par, num_input, num_input_lstm, hidden_size)

    out = lstm_skeleton_forward(features, lengths, params,
                                conf_threshold=conf_threshold)
    out = jax.block_until_ready(out)

    ref = reference_forward(features, lengths, params,
                            conf_threshold=conf_threshold)
    assert out.shape == (B, hidden_size)
    assert jnp.allclose(out, ref, atol=1e-2, rtol=1e-2), "mismatch vs reference"

    print("KERNEL_OK")
</pallas_src>

<mosaic_0001>
module attributes {stable_mosaic.version = 11 : i64} {
  func.func @_lstm_skeleton_kernel(%arg0: memref<64x16xbf16, #tpu.memory_space<vmem>>, %arg1: memref<8x1xi32, #tpu.memory_space<vmem>>, %arg2: memref<16x32xbf16, #tpu.memory_space<vmem>>, %arg3: memref<1x32xf32, #tpu.memory_space<vmem>>, %arg4: memref<32x128xbf16, #tpu.memory_space<vmem>>, %arg5: memref<32x128xbf16, #tpu.memory_space<vmem>>, %arg6: memref<1x128xf32, #tpu.memory_space<vmem>>, %arg7: memref<8x32xf32, #tpu.memory_space<vmem>>) attributes {dimension_semantics = [], scalar_prefetch = 0 : i64, scratch_operands = 0 : i64, tpu.core_type = #tpu.core_type<tc>} {
    %c0 = arith.constant 0 : index
    %c0_0 = arith.constant 0 : index
    %0 = vector.load %arg0[%c0, %c0_0] : memref<64x16xbf16, #tpu.memory_space<vmem>>, vector<64x16xbf16>
    %c0_1 = arith.constant 0 : index
    %c0_2 = arith.constant 0 : index
    %1 = vector.load %arg2[%c0_1, %c0_2] : memref<16x32xbf16, #tpu.memory_space<vmem>>, vector<16x32xbf16>
    %cst = arith.constant dense<0.000000e+00> : vector<64x32xf32>
    %2 = tpu.matmul %0, %1, %cst {dimension_numbers = #tpu.dot_dimension_numbers<[1], [0], [0], [1], [0, 0, 1, 1], [], []>} : vector<64x16xbf16>, vector<16x32xbf16>, vector<64x32xf32> -> vector<64x32xf32>
    %c0_3 = arith.constant 0 : index
    %c0_4 = arith.constant 0 : index
    %3 = vector.load %arg3[%c0_3, %c0_4] : memref<1x32xf32, #tpu.memory_space<vmem>>, vector<1x32xf32>
    %4 = vector.broadcast %3 : vector<1x32xf32> to vector<64x32xf32>
    %5 = arith.addf %2, %4 : vector<64x32xf32>
    %cst_5 = arith.constant 0.000000e+00 : f32
    %6 = vector.broadcast %cst_5 : f32 to vector<64x32xf32>
    %7 = arith.maximumf %5, %6 : vector<64x32xf32>
    %8 = arith.truncf %7 : vector<64x32xf32> to vector<64x32xbf16>
    %c0_6 = arith.constant 0 : index
    %c0_7 = arith.constant 0 : index
    %9 = vector.load %arg4[%c0_6, %c0_7] : memref<32x128xbf16, #tpu.memory_space<vmem>>, vector<32x128xbf16>
    %cst_8 = arith.constant dense<0.000000e+00> : vector<64x128xf32>
    %10 = tpu.matmul %8, %9, %cst_8 {dimension_numbers = #tpu.dot_dimension_numbers<[1], [0], [0], [1], [0, 0, 1, 1], [], []>} : vector<64x32xbf16>, vector<32x128xbf16>, vector<64x128xf32> -> vector<64x128xf32>
    %c0_9 = arith.constant 0 : index
    %c0_10 = arith.constant 0 : index
    %11 = vector.load %arg6[%c0_9, %c0_10] : memref<1x128xf32, #tpu.memory_space<vmem>>, vector<1x128xf32>
    %12 = vector.broadcast %11 : vector<1x128xf32> to vector<64x128xf32>
    %13 = arith.addf %10, %12 : vector<64x128xf32>
    %c0_11 = arith.constant 0 : index
    %c0_12 = arith.constant 0 : index
    %14 = vector.load %arg5[%c0_11, %c0_12] : memref<32x128xbf16, #tpu.memory_space<vmem>>, vector<32x128xbf16>
    %c0_13 = arith.constant 0 : index
    %c0_14 = arith.constant 0 : index
    %15 = vector.load %arg1[%c0_13, %c0_14] : memref<8x1xi32, #tpu.memory_space<vmem>>, vector<8x1xi32>
    %16 = vector.shape_cast %15 : vector<8x1xi32> to vector<8x1xi32>
    %17 = vector.broadcast %16 : vector<8x1xi32> to vector<8x32xi32>
    %18 = tpu.iota {dimensions = array<i32: 1>} : vector<8x128xi32>
    %c64_i32 = arith.constant 64 : i32
    %19 = vector.broadcast %c64_i32 : i32 to vector<8x128xi32>
    %20 = arith.cmpi sge, %18, %19 : vector<8x128xi32>
    %c96_i32 = arith.constant 96 : i32
    %21 = vector.broadcast %c96_i32 : i32 to vector<8x128xi32>
    %22 = arith.cmpi slt, %18, %21 : vector<8x128xi32>
    %23 = arith.andi %20, %22 : vector<8x128xi1>
    %cst_15 = arith.constant 2.000000e+00 : f32
    %cst_16 = arith.constant 1.000000e+00 : f32
    %24 = vector.broadcast %cst_15 : f32 to vector<8x128xf32>
    %25 = vector.broadcast %cst_16 : f32 to vector<8x128xf32>
    %26 = arith.select %23, %24, %25 : vector<8x128xi1>, vector<8x128xf32>
    %cst_17 = arith.constant -1.000000e+00 : f32
    %cst_18 = arith.constant 0.000000e+00 : f32
    %27 = vector.broadcast %cst_17 : f32 to vector<8x128xf32>
    %28 = vector.broadcast %cst_18 : f32 to vector<8x128xf32>
    %29 = arith.select %23, %27, %28 : vector<8x128xi1>, vector<8x128xf32>
    %cst_19 = arith.constant 0.000000e+00 : f32
    %30 = vector.broadcast %cst_19 : f32 to vector<8x32xf32>
    %cst_20 = arith.constant 0.000000e+00 : f32
    %31 = vector.broadcast %cst_20 : f32 to vector<8x32xf32>
    %cst_21 = arith.constant 0.000000e+00 : f32
    %32 = vector.broadcast %cst_21 : f32 to vector<8x32xf32>
    %33 = vector.extract_strided_slice %13 {offsets = [0, 0], sizes = [8, 128], strides = [1, 1]} : vector<64x128xf32> to vector<8x128xf32>
    %34 = arith.truncf %30 : vector<8x32xf32> to vector<8x32xbf16>
    %cst_22 = arith.constant dense<0.000000e+00> : vector<8x128xf32>
    %35 = tpu.matmul %34, %14, %cst_22 {dimension_numbers = #tpu.dot_dimension_numbers<[1], [0], [0], [1], [0, 0, 1, 1], [], []>} : vector<8x32xbf16>, vector<32x128xbf16>, vector<8x128xf32> -> vector<8x128xf32>
    %36 = arith.addf %33, %35 : vector<8x128xf32>
    %37 = arith.negf %36 : vector<8x128xf32>
    %38 = math.exp %37 : vector<8x128xf32>
    %cst_23 = arith.constant 1.000000e+00 : f32
    %39 = vector.broadcast %cst_23 : f32 to vector<8x128xf32>
    %40 = arith.addf %39, %38 : vector<8x128xf32>
    %41 = arith.divf %39, %40 : vector<8x128xf32>
    %42 = arith.mulf %41, %26 : vector<8x128xf32>
    %43 = arith.addf %42, %29 : vector<8x128xf32>
    %44 = vector.extract_strided_slice %43 {offsets = [0, 0], sizes = [8, 32], strides = [1, 1]} : vector<8x128xf32> to vector<8x32xf32>
    %45 = vector.extract_strided_slice %43 {offsets = [0, 32], sizes = [8, 32], strides = [1, 1]} : vector<8x128xf32> to vector<8x32xf32>
    %46 = vector.extract_strided_slice %43 {offsets = [0, 64], sizes = [8, 32], strides = [1, 1]} : vector<8x128xf32> to vector<8x32xf32>
    %47 = vector.extract_strided_slice %43 {offsets = [0, 96], sizes = [8, 32], strides = [1, 1]} : vector<8x128xf32> to vector<8x32xf32>
    %48 = arith.mulf %45, %31 : vector<8x32xf32>
    %49 = arith.mulf %44, %46 : vector<8x32xf32>
    %50 = arith.addf %48, %49 : vector<8x32xf32>
    %51 = math.tanh %50 : vector<8x32xf32>
    %52 = arith.mulf %47, %51 : vector<8x32xf32>
    %c0_i32 = arith.constant 0 : i32
    %53 = vector.broadcast %c0_i32 : i32 to vector<8x32xi32>
    %54 = arith.cmpi sgt, %17, %53 : vector<8x32xi32>
    %55 = arith.select %54, %52, %30 : vector<8x32xi1>, vector<8x32xf32>
    %56 = arith.select %54, %50, %31 : vector<8x32xi1>, vector<8x32xf32>
    %cst_24 = arith.constant 0.000000e+00 : f32
    %57 = vector.broadcast %cst_24 : f32 to vector<8x32xf32>
    %58 = arith.select %54, %52, %57 : vector<8x32xi1>, vector<8x32xf32>
    %59 = arith.addf %32, %58 : vector<8x32xf32>
    %60 = vector.extract_strided_slice %13 {offsets = [8, 0], sizes = [8, 128], strides = [1, 1]} : vector<64x128xf32> to vector<8x128xf32>
    %61 = arith.truncf %55 : vector<8x32xf32> to vector<8x32xbf16>
    %cst_25 = arith.constant dense<0.000000e+00> : vector<8x128xf32>
    %62 = tpu.matmul %61, %14, %cst_25 {dimension_numbers = #tpu.dot_dimension_numbers<[1], [0], [0], [1], [0, 0, 1, 1], [], []>} : vector<8x32xbf16>, vector<32x128xbf16>, vector<8x128xf32> -> vector<8x128xf32>
    %63 = arith.addf %60, %62 : vector<8x128xf32>
    %64 = arith.negf %63 : vector<8x128xf32>
    %65 = math.exp %64 : vector<8x128xf32>
    %cst_26 = arith.constant 1.000000e+00 : f32
    %66 = vector.broadcast %cst_26 : f32 to vector<8x128xf32>
    %67 = arith.addf %66, %65 : vector<8x128xf32>
    %68 = arith.divf %66, %67 : vector<8x128xf32>
    %69 = arith.mulf %68, %26 : vector<8x128xf32>
    %70 = arith.addf %69, %29 : vector<8x128xf32>
    %71 = vector.extract_strided_slice %70 {offsets = [0, 0], sizes = [8, 32], strides = [1, 1]} : vector<8x128xf32> to vector<8x32xf32>
    %72 = vector.extract_strided_slice %70 {offsets = [0, 32], sizes = [8, 32], strides = [1, 1]} : vector<8x128xf32> to vector<8x32xf32>
    %73 = vector.extract_strided_slice %70 {offsets = [0, 64], sizes = [8, 32], strides = [1, 1]} : vector<8x128xf32> to vector<8x32xf32>
    %74 = vector.extract_strided_slice %70 {offsets = [0, 96], sizes = [8, 32], strides = [1, 1]} : vector<8x128xf32> to vector<8x32xf32>
    %75 = arith.mulf %72, %56 : vector<8x32xf32>
    %76 = arith.mulf %71, %73 : vector<8x32xf32>
    %77 = arith.addf %75, %76 : vector<8x32xf32>
    %78 = math.tanh %77 : vector<8x32xf32>
    %79 = arith.mulf %74, %78 : vector<8x32xf32>
    %c1_i32 = arith.constant 1 : i32
    %80 = vector.broadcast %c1_i32 : i32 to vector<8x32xi32>
    %81 = arith.cmpi sgt, %17, %80 : vector<8x32xi32>
    %82 = arith.select %81, %79, %55 : vector<8x32xi1>, vector<8x32xf32>
    %83 = arith.select %81, %77, %56 : vector<8x32xi1>, vector<8x32xf32>
    %cst_27 = arith.constant 0.000000e+00 : f32
    %84 = vector.broadcast %cst_27 : f32 to vector<8x32xf32>
    %85 = arith.select %81, %79, %84 : vector<8x32xi1>, vector<8x32xf32>
    %86 = arith.addf %59, %85 : vector<8x32xf32>
    %87 = vector.extract_strided_slice %13 {offsets = [16, 0], sizes = [8, 128], strides = [1, 1]} : vector<64x128xf32> to vector<8x128xf32>
    %88 = arith.truncf %82 : vector<8x32xf32> to vector<8x32xbf16>
    %cst_28 = arith.constant dense<0.000000e+00> : vector<8x128xf32>
    %89 = tpu.matmul %88, %14, %cst_28 {dimension_numbers = #tpu.dot_dimension_numbers<[1], [0], [0], [1], [0, 0, 1, 1], [], []>} : vector<8x32xbf16>, vector<32x128xbf16>, vector<8x128xf32> -> vector<8x128xf32>
    %90 = arith.addf %87, %89 : vector<8x128xf32>
    %91 = arith.negf %90 : vector<8x128xf32>
    %92 = math.exp %91 : vector<8x128xf32>
    %cst_29 = arith.constant 1.000000e+00 : f32
    %93 = vector.broadcast %cst_29 : f32 to vector<8x128xf32>
    %94 = arith.addf %93, %92 : vector<8x128xf32>
    %95 = arith.divf %93, %94 : vector<8x128xf32>
    %96 = arith.mulf %95, %26 : vector<8x128xf32>
    %97 = arith.addf %96, %29 : vector<8x128xf32>
    %98 = vector.extract_strided_slice %97 {offsets = [0, 0], sizes = [8, 32], strides = [1, 1]} : vector<8x128xf32> to vector<8x32xf32>
    %99 = vector.extract_strided_slice %97 {offsets = [0, 32], sizes = [8, 32], strides = [1, 1]} : vector<8x128xf32> to vector<8x32xf32>
    %100 = vector.extract_strided_slice %97 {offsets = [0, 64], sizes = [8, 32], strides = [1, 1]} : vector<8x128xf32> to vector<8x32xf32>
    %101 = vector.extract_strided_slice %97 {offsets = [0, 96], sizes = [8, 32], strides = [1, 1]} : vector<8x128xf32> to vector<8x32xf32>
    %102 = arith.mulf %99, %83 : vector<8x32xf32>
    %103 = arith.mulf %98, %100 : vector<8x32xf32>
    %104 = arith.addf %102, %103 : vector<8x32xf32>
    %105 = math.tanh %104 : vector<8x32xf32>
    %106 = arith.mulf %101, %105 : vector<8x32xf32>
    %c2_i32 = arith.constant 2 : i32
    %107 = vector.broadcast %c2_i32 : i32 to vector<8x32xi32>
    %108 = arith.cmpi sgt, %17, %107 : vector<8x32xi32>
    %109 = arith.select %108, %106, %82 : vector<8x32xi1>, vector<8x32xf32>
    %110 = arith.select %108, %104, %83 : vector<8x32xi1>, vector<8x32xf32>
    %cst_30 = arith.constant 0.000000e+00 : f32
    %111 = vector.broadcast %cst_30 : f32 to vector<8x32xf32>
    %112 = arith.select %108, %106, %111 : vector<8x32xi1>, vector<8x32xf32>
    %113 = arith.addf %86, %112 : vector<8x32xf32>
    %114 = vector.extract_strided_slice %13 {offsets = [24, 0], sizes = [8, 128], strides = [1, 1]} : vector<64x128xf32> to vector<8x128xf32>
    %115 = arith.truncf %109 : vector<8x32xf32> to vector<8x32xbf16>
    %cst_31 = arith.constant dense<0.000000e+00> : vector<8x128xf32>
    %116 = tpu.matmul %115, %14, %cst_31 {dimension_numbers = #tpu.dot_dimension_numbers<[1], [0], [0], [1], [0, 0, 1, 1], [], []>} : vector<8x32xbf16>, vector<32x128xbf16>, vector<8x128xf32> -> vector<8x128xf32>
    %117 = arith.addf %114, %116 : vector<8x128xf32>
    %118 = arith.negf %117 : vector<8x128xf32>
    %119 = math.exp %118 : vector<8x128xf32>
    %cst_32 = arith.constant 1.000000e+00 : f32
    %120 = vector.broadcast %cst_32 : f32 to vector<8x128xf32>
    %121 = arith.addf %120, %119 : vector<8x128xf32>
    %122 = arith.divf %120, %121 : vector<8x128xf32>
    %123 = arith.mulf %122, %26 : vector<8x128xf32>
    %124 = arith.addf %123, %29 : vector<8x128xf32>
    %125 = vector.extract_strided_slice %124 {offsets = [0, 0], sizes = [8, 32], strides = [1, 1]} : vector<8x128xf32> to vector<8x32xf32>
    %126 = vector.extract_strided_slice %124 {offsets = [0, 32], sizes = [8, 32], strides = [1, 1]} : vector<8x128xf32> to vector<8x32xf32>
    %127 = vector.extract_strided_slice %124 {offsets = [0, 64], sizes = [8, 32], strides = [1, 1]} : vector<8x128xf32> to vector<8x32xf32>
    %128 = vector.extract_strided_slice %124 {offsets = [0, 96], sizes = [8, 32], strides = [1, 1]} : vector<8x128xf32> to vector<8x32xf32>
    %129 = arith.mulf %126, %110 : vector<8x32xf32>
    %130 = arith.mulf %125, %127 : vector<8x32xf32>
    %131 = arith.addf %129, %130 : vector<8x32xf32>
    %132 = math.tanh %131 : vector<8x32xf32>
    %133 = arith.mulf %128, %132 : vector<8x32xf32>
    %c3_i32 = arith.constant 3 : i32
    %134 = vector.broadcast %c3_i32 : i32 to vector<8x32xi32>
    %135 = arith.cmpi sgt, %17, %134 : vector<8x32xi32>
    %136 = arith.select %135, %133, %109 : vector<8x32xi1>, vector<8x32xf32>
    %137 = arith.select %135, %131, %110 : vector<8x32xi1>, vector<8x32xf32>
    %cst_33 = arith.constant 0.000000e+00 : f32
    %138 = vector.broadcast %cst_33 : f32 to vector<8x32xf32>
    %139 = arith.select %135, %133, %138 : vector<8x32xi1>, vector<8x32xf32>
    %140 = arith.addf %113, %139 : vector<8x32xf32>
    %141 = vector.extract_strided_slice %13 {offsets = [32, 0], sizes = [8, 128], strides = [1, 1]} : vector<64x128xf32> to vector<8x128xf32>
    %142 = arith.truncf %136 : vector<8x32xf32> to vector<8x32xbf16>
    %cst_34 = arith.constant dense<0.000000e+00> : vector<8x128xf32>
    %143 = tpu.matmul %142, %14, %cst_34 {dimension_numbers = #tpu.dot_dimension_numbers<[1], [0], [0], [1], [0, 0, 1, 1], [], []>} : vector<8x32xbf16>, vector<32x128xbf16>, vector<8x128xf32> -> vector<8x128xf32>
    %144 = arith.addf %141, %143 : vector<8x128xf32>
    %145 = arith.negf %144 : vector<8x128xf32>
    %146 = math.exp %145 : vector<8x128xf32>
    %cst_35 = arith.constant 1.000000e+00 : f32
    %147 = vector.broadcast %cst_35 : f32 to vector<8x128xf32>
    %148 = arith.addf %147, %146 : vector<8x128xf32>
    %149 = arith.divf %147, %148 : vector<8x128xf32>
    %150 = arith.mulf %149, %26 : vector<8x128xf32>
    %151 = arith.addf %150, %29 : vector<8x128xf32>
    %152 = vector.extract_strided_slice %151 {offsets = [0, 0], sizes = [8, 32], strides = [1, 1]} : vector<8x128xf32> to vector<8x32xf32>
    %153 = vector.extract_strided_slice %151 {offsets = [0, 32], sizes = [8, 32], strides = [1, 1]} : vector<8x128xf32> to vector<8x32xf32>
    %154 = vector.extract_strided_slice %151 {offsets = [0, 64], sizes = [8, 32], strides = [1, 1]} : vector<8x128xf32> to vector<8x32xf32>
    %155 = vector.extract_strided_slice %151 {offsets = [0, 96], sizes = [8, 32], strides = [1, 1]} : vector<8x128xf32> to vector<8x32xf32>
    %156 = arith.mulf %153, %137 : vector<8x32xf32>
    %157 = arith.mulf %152, %154 : vector<8x32xf32>
    %158 = arith.addf %156, %157 : vector<8x32xf32>
    %159 = math.tanh %158 : vector<8x32xf32>
    %160 = arith.mulf %155, %159 : vector<8x32xf32>
    %c4_i32 = arith.constant 4 : i32
    %161 = vector.broadcast %c4_i32 : i32 to vector<8x32xi32>
    %162 = arith.cmpi sgt, %17, %161 : vector<8x32xi32>
    %163 = arith.select %162, %160, %136 : vector<8x32xi1>, vector<8x32xf32>
    %164 = arith.select %162, %158, %137 : vector<8x32xi1>, vector<8x32xf32>
    %cst_36 = arith.constant 0.000000e+00 : f32
    %165 = vector.broadcast %cst_36 : f32 to vector<8x32xf32>
    %166 = arith.select %162, %160, %165 : vector<8x32xi1>, vector<8x32xf32>
    %167 = arith.addf %140, %166 : vector<8x32xf32>
    %168 = vector.extract_strided_slice %13 {offsets = [40, 0], sizes = [8, 128], strides = [1, 1]} : vector<64x128xf32> to vector<8x128xf32>
    %169 = arith.truncf %163 : vector<8x32xf32> to vector<8x32xbf16>
    %cst_37 = arith.constant dense<0.000000e+00> : vector<8x128xf32>
    %170 = tpu.matmul %169, %14, %cst_37 {dimension_numbers = #tpu.dot_dimension_numbers<[1], [0], [0], [1], [0, 0, 1, 1], [], []>} : vector<8x32xbf16>, vector<32x128xbf16>, vector<8x128xf32> -> vector<8x128xf32>
    %171 = arith.addf %168, %170 : vector<8x128xf32>
    %172 = arith.negf %171 : vector<8x128xf32>
    %173 = math.exp %172 : vector<8x128xf32>
    %cst_38 = arith.constant 1.000000e+00 : f32
    %174 = vector.broadcast %cst_38 : f32 to vector<8x128xf32>
    %175 = arith.addf %174, %173 : vector<8x128xf32>
    %176 = arith.divf %174, %175 : vector<8x128xf32>
    %177 = arith.mulf %176, %26 : vector<8x128xf32>
    %178 = arith.addf %177, %29 : vector<8x128xf32>
    %179 = vector.extract_strided_slice %178 {offsets = [0, 0], sizes = [8, 32], strides = [1, 1]} : vector<8x128xf32> to vector<8x32xf32>
    %180 = vector.extract_strided_slice %178 {offsets = [0, 32], sizes = [8, 32], strides = [1, 1]} : vector<8x128xf32> to vector<8x32xf32>
    %181 = vector.extract_strided_slice %178 {offsets = [0, 64], sizes = [8, 32], strides = [1, 1]} : vector<8x128xf32> to vector<8x32xf32>
    %182 = vector.extract_strided_slice %178 {offsets = [0, 96], sizes = [8, 32], strides = [1, 1]} : vector<8x128xf32> to vector<8x32xf32>
    %183 = arith.mulf %180, %164 : vector<8x32xf32>
    %184 = arith.mulf %179, %181 : vector<8x32xf32>
    %185 = arith.addf %183, %184 : vector<8x32xf32>
    %186 = math.tanh %185 : vector<8x32xf32>
    %187 = arith.mulf %182, %186 : vector<8x32xf32>
    %c5_i32 = arith.constant 5 : i32
    %188 = vector.broadcast %c5_i32 : i32 to vector<8x32xi32>
    %189 = arith.cmpi sgt, %17, %188 : vector<8x32xi32>
    %190 = arith.select %189, %187, %163 : vector<8x32xi1>, vector<8x32xf32>
    %191 = arith.select %189, %185, %164 : vector<8x32xi1>, vector<8x32xf32>
    %cst_39 = arith.constant 0.000000e+00 : f32
    %192 = vector.broadcast %cst_39 : f32 to vector<8x32xf32>
    %193 = arith.select %189, %187, %192 : vector<8x32xi1>, vector<8x32xf32>
    %194 = arith.addf %167, %193 : vector<8x32xf32>
    %195 = vector.extract_strided_slice %13 {offsets = [48, 0], sizes = [8, 128], strides = [1, 1]} : vector<64x128xf32> to vector<8x128xf32>
    %196 = arith.truncf %190 : vector<8x32xf32> to vector<8x32xbf16>
    %cst_40 = arith.constant dense<0.000000e+00> : vector<8x128xf32>
    %197 = tpu.matmul %196, %14, %cst_40 {dimension_numbers = #tpu.dot_dimension_numbers<[1], [0], [0], [1], [0, 0, 1, 1], [], []>} : vector<8x32xbf16>, vector<32x128xbf16>, vector<8x128xf32> -> vector<8x128xf32>
    %198 = arith.addf %195, %197 : vector<8x128xf32>
    %199 = arith.negf %198 : vector<8x128xf32>
    %200 = math.exp %199 : vector<8x128xf32>
    %cst_41 = arith.constant 1.000000e+00 : f32
    %201 = vector.broadcast %cst_41 : f32 to vector<8x128xf32>
    %202 = arith.addf %201, %200 : vector<8x128xf32>
    %203 = arith.divf %201, %202 : vector<8x128xf32>
    %204 = arith.mulf %203, %26 : vector<8x128xf32>
    %205 = arith.addf %204, %29 : vector<8x128xf32>
    %206 = vector.extract_strided_slice %205 {offsets = [0, 0], sizes = [8, 32], strides = [1, 1]} : vector<8x128xf32> to vector<8x32xf32>
    %207 = vector.extract_strided_slice %205 {offsets = [0, 32], sizes = [8, 32], strides = [1, 1]} : vector<8x128xf32> to vector<8x32xf32>
    %208 = vector.extract_strided_slice %205 {offsets = [0, 64], sizes = [8, 32], strides = [1, 1]} : vector<8x128xf32> to vector<8x32xf32>
    %209 = vector.extract_strided_slice %205 {offsets = [0, 96], sizes = [8, 32], strides = [1, 1]} : vector<8x128xf32> to vector<8x32xf32>
    %210 = arith.mulf %207, %191 : vector<8x32xf32>
    %211 = arith.mulf %206, %208 : vector<8x32xf32>
    %212 = arith.addf %210, %211 : vector<8x32xf32>
    %213 = math.tanh %212 : vector<8x32xf32>
    %214 = arith.mulf %209, %213 : vector<8x32xf32>
    %c6_i32 = arith.constant 6 : i32
    %215 = vector.broadcast %c6_i32 : i32 to vector<8x32xi32>
    %216 = arith.cmpi sgt, %17, %215 : vector<8x32xi32>
    %217 = arith.select %216, %214, %190 : vector<8x32xi1>, vector<8x32xf32>
    %218 = arith.select %216, %212, %191 : vector<8x32xi1>, vector<8x32xf32>
    %cst_42 = arith.constant 0.000000e+00 : f32
    %219 = vector.broadcast %cst_42 : f32 to vector<8x32xf32>
    %220 = arith.select %216, %214, %219 : vector<8x32xi1>, vector<8x32xf32>
    %221 = arith.addf %194, %220 : vector<8x32xf32>
    %222 = vector.extract_strided_slice %13 {offsets = [56, 0], sizes = [8, 128], strides = [1, 1]} : vector<64x128xf32> to vector<8x128xf32>
    %223 = arith.truncf %217 : vector<8x32xf32> to vector<8x32xbf16>
    %cst_43 = arith.constant dense<0.000000e+00> : vector<8x128xf32>
    %224 = tpu.matmul %223, %14, %cst_43 {dimension_numbers = #tpu.dot_dimension_numbers<[1], [0], [0], [1], [0, 0, 1, 1], [], []>} : vector<8x32xbf16>, vector<32x128xbf16>, vector<8x128xf32> -> vector<8x128xf32>
    %225 = arith.addf %222, %224 : vector<8x128xf32>
    %226 = arith.negf %225 : vector<8x128xf32>
    %227 = math.exp %226 : vector<8x128xf32>
    %cst_44 = arith.constant 1.000000e+00 : f32
    %228 = vector.broadcast %cst_44 : f32 to vector<8x128xf32>
    %229 = arith.addf %228, %227 : vector<8x128xf32>
    %230 = arith.divf %228, %229 : vector<8x128xf32>
    %231 = arith.mulf %230, %26 : vector<8x128xf32>
    %232 = arith.addf %231, %29 : vector<8x128xf32>
    %233 = vector.extract_strided_slice %232 {offsets = [0, 0], sizes = [8, 32], strides = [1, 1]} : vector<8x128xf32> to vector<8x32xf32>
    %234 = vector.extract_strided_slice %232 {offsets = [0, 32], sizes = [8, 32], strides = [1, 1]} : vector<8x128xf32> to vector<8x32xf32>
    %235 = vector.extract_strided_slice %232 {offsets = [0, 64], sizes = [8, 32], strides = [1, 1]} : vector<8x128xf32> to vector<8x32xf32>
    %236 = vector.extract_strided_slice %232 {offsets = [0, 96], sizes = [8, 32], strides = [1, 1]} : vector<8x128xf32> to vector<8x32xf32>
    %237 = arith.mulf %234, %218 : vector<8x32xf32>
    %238 = arith.mulf %233, %235 : vector<8x32xf32>
    %239 = arith.addf %237, %238 : vector<8x32xf32>
    %240 = math.tanh %239 : vector<8x32xf32>
    %241 = arith.mulf %236, %240 : vector<8x32xf32>
    %c7_i32 = arith.constant 7 : i32
    %242 = vector.broadcast %c7_i32 : i32 to vector<8x32xi32>
    %243 = arith.cmpi sgt, %17, %242 : vector<8x32xi32>
    %cst_45 = arith.constant 0.000000e+00 : f32
    %244 = vector.broadcast %cst_45 : f32 to vector<8x32xf32>
    %245 = arith.select %243, %241, %244 : vector<8x32xi1>, vector<8x32xf32>
    %246 = arith.addf %221, %245 : vector<8x32xf32>
    %247 = arith.sitofp %15 : vector<8x1xi32> to vector<8x1xf32>
    %248 = vector.broadcast %247 : vector<8x1xf32> to vector<8x32xf32>
    %249 = arith.divf %246, %248 : vector<8x32xf32>
    %c0_46 = arith.constant 0 : index
    %c0_47 = arith.constant 0 : index
    %250 = vector.load %arg7[%c0_46, %c0_47] : memref<8x32xf32, #tpu.memory_space<vmem>>, vector<8x32xf32>
    tpu.vector_store %arg7[%c0_46, %c0_47], %249 {strides = array<i32>} : memref<8x32xf32, #tpu.memory_space<vmem>>, vector<8x32xf32>,
    return
  }
}

</mosaic_0001>

<bundles_post_ra>
// kernel: tpu_custom_call.1
= control target key start
LH: loop header
LB: loop body
LE: loop exit
PB: predicated region body
PF: predicated region fallthrough
CT: control target
= control target key end

     0   :  { %vm71_vm0 = vcmask 130048   ;;  %v1180_v4 = vmov 0.0   ;;  %s1474_s0 = inlined_call_operand.vmem [shape: bf16[64,16], index: 0, kind: input, shape index: {}]   ;;  %s1475_s1 = inlined_call_operand.vmem [shape: s32[8,1], index: 1, kind: input, shape index: {}]   ;;  %s1476_s2 = inlined_call_operand.vmem [shape: bf16[16,32], index: 2, kind: input, shape index: {}]   ;;  %s1477_s3 = inlined_call_operand.vmem [shape: f32[1,32], index: 3, kind: input, shape index: {}]   ;;  %s1478_s4 = inlined_call_operand.vmem [shape: bf16[32,128], index: 4, kind: input, shape index: {}]   ;;  %s1479_s5 = inlined_call_operand.vmem [shape: bf16[32,128], index: 5, kind: input, shape index: {}]   ;;  %s1480_s6 = inlined_call_operand.vmem [shape: f32[1,128], index: 6, kind: input, shape index: {}]   ;;  %s1481_s7 = inlined_call_operand.hbm [shape: f32[8,32], index: 7, kind: output, shape index: {}]  }
   0x1   :  { %v1097_v0 = vld [vmem:[%s1476_s2] sm:$0xff]   ;;  %v1099_v2 = vld [vmem:[%s1474_s0 + $0x8] sm:$0xff]   ;;  %v1100_v3 = vld [vmem:[%s1474_s0 + $0x10] sm:$0xff]  }
   0x2   :  { %v1098_v1 = vld [vmem:[%s1474_s0] sm:$0xff]   ;;  %1002 = vmatprep.subr.bf16.mxu0 %v1097_v0 }
   0x3   :  { %1003 = vmatpush3.bf16.msra.mxu0 %v1097_v0  ;;  %1004 = vmatprep.mubr.msk.bf16.mxu0 %vm71_vm0, %v1098_v1  ;;  %v1244_v5 = vld [vmem:[%s1479_s5] sm:$0xff]  }
   0x4   :  { %1024 = vmatprep.subr.bf16.mxu0 %v1180_v4 }
   0x6   :  { %1005 = vmatmul.mubr.msk.bf16.vlgmr.msra.gmra.mrb[0].mxu0 %vm71_vm0, %v1099_v2 }
   0x7   :  { %1008 = vmatprep.mubr.msk.bf16.mxu0 %vm71_vm0, %v1100_v3  ;;  %1025 = vmatpush3.bf16.msra.mxu0 %v1244_v5 }
   0x8   :  { %1026 = vmatprep.subr.bf16.mxu0 %v1180_v4 }
   0x9   :  { %12 = vsyncpa [#allocation3], 0  ;;  %v1102_v6 = vld [vmem:[%s1474_s0 + $0x18] sm:$0xff]   ;;  %v1103_v7 = vld [vmem:[%s1478_s4] sm:$0xff]   ;;  %vm1181_vm1 = vmmov 0   ;;  %v1182_v10 = vmov 0   ;;  %v270_v56 = vlaneseq }
   0xa   :  { %1012 = vmatprep.subr.bf16.mxu1 %v1103_v7  ;;  %v1105_v8 = vld [vmem:[%s1478_s4 + $0x8] sm:$0xff]   ;;  %1095 = vset.pattern.permute.xlu1 %v1182_v10  ;;  %v933_v11 = vld [vmem:[%s1477_s3] ss:$0 sm:$0xff]  ;;  %vm184_vm2 = vcmask 261120   ;;  %v1183_v3 = vmov 1.0   ;;  %s1186_s20 = smov [#allocation2]  }
   0xb   :  { %1013 = vmatpush3.bf16.msra.mxu1 %v1103_v7  ;;  %v1263_v9 = vld [vmem:[%s1479_s5 + $0x8] sm:$0xff]   ;;  %1096 = vset.pattern.permute.xlu0 %v1182_v10  ;;  %v1292_v44 = vld [vmem:[%s1475_s1] sm:$0xff]  ;;  %v271_v59 = vand.u32 127, %v270_v56  ;;  %s1184_s1 = smov 64   ;;  %s925_s21 = sshll.u32 %s1186_s20, 4  ;;  %s926_s21 = int_to_ptr.vmem [resolvable:$true] %s925_s21 }
   0xc   :  { %1014 = vmatprep.subr.bf16.mxu1 %v1105_v8  ;;  %1027 = vmatpush3.bf16.msra.mxu0 %v1263_v9  ;;  %v943_v45 = vld [vmem:[%s1480_s6] ss:$0 sm:$0xff]  ;;  %s1185_s6 = smov 32   ;;  %s1156_s22 = scalar_lea.vmem %s926_s21, 128 }
   0xd   :  { %1040 = vmatprep.subr.bf16.mxu0 %v1180_v4  ;;  %268 = vperm.xlu1 %1095, %v1292_v44   ;;  %vm272_vm3 = vcmp.ge.s32.totalorder %v271_v59, 64  ;;  %vm273_vm4 = vcmp.lt.s32.totalorder %v271_v59, 96  ;;  %p1157_p0 = scmp.ne.s32.totalorder %s926_s21, %s1156_s22  ;;  %p1161_p1 = scmp.lt.s32.totalorder %s926_s21, %s926_s21 }
   0xe   :  { %1009 = vmatmul.mubr.msk.bf16.gmra.mrb[4].mxu0 %vm71_vm0, %v1102_v6  ;;  %vm274_vm5 = vmand %vm272_vm3, %vm273_vm4  ;;  %p1162_p2 = scmp.lt.s32.totalorder %s1156_s22, %s1156_s22 }
   0xf   :  { %1015 = vmatpush3.bf16.msra.mxu1 %v1105_v8  ;;  %1028 = vmatprep.mubr.msk.bf16.mxu0 %vm1181_vm1, %v1180_v4  ;;  %v1308_v6 = vsel %vm274_vm5, 2.0, %v1183_v3 }
  0x10   :  { %1032 = vmatprep.subr.bf16.mxu1 %v1180_v4  ;;  %p1163_p3 = por %p1162_p2, %p1161_p1 }
  0x12   :  { %p1164_p4 = pnand %p1163_p3, %p1157_p0 }
  0x16   :  { %1029 = vmatmul.mubr.bf16.vlgmr.msra.gmra.mrb[8].mxu0 %v1182_v10  ;;  %v1313_v10 = vsel %vm274_vm5, -1.0, %v1180_v4 }
  0x17   :  { %1041 = vmatpush3.bf16.msra.mxu0 %v1244_v5  ;;  %1044 = vmatprep.mubr.msk.bf16.mxu0 %vm1181_vm1, %v1180_v4 }
  0x18   :  { %1042 = vmatprep.subr.bf16.mxu0 %v1180_v4 }
  0x1b   :  { %1043 = vmatpush3.bf16.msra.mxu0 %v1263_v9 }
  0x1c   :  { %1056 = vmatprep.subr.bf16.mxu0 %v1180_v4 }
  0xd9   :  { %v1006_v12 = vpop.f32.mrb[0].mxu0 }
  0xda   :  { %v127_v13 = vadd.f32 %v1006_v12, %v933_v11  ;;  %v118_v14 = vpop.f32.mrb[1].mxu0 }
  0xdb   :  { %v119_v15 = vadd.f32 %v933_v11, %v118_v14  ;;  %v1007_v16 = vpop.f32.mrb[2].mxu0 }
  0xdc   :  { %v130_v17 = vadd.f32 %v1007_v16, %v933_v11  ;;  %v121_v18 = vpop.f32.mrb[3].mxu0  ;;  %v151_v20 = vmax.f32 %v127_v13, 0.0 }
  0xdd   :  { %v122_v19 = vadd.f32 %v933_v11, %v121_v18  ;;  %v149_v22 = vmax.f32 %v119_v15, 0.0 }
  0xde   :  { %v152_v21 = vmax.f32 %v130_v17, 0.0 }
  0xdf   :  { %v150_v23 = vmax.f32 %v122_v19, 0.0  ;;  %v1320_v19 = vpop.permute.xlu1 %268 }
  0xe0   :  { %v158_v24 = vpack.c.bf16 %v152_v21, %v151_v20  ;;  %vm358_vm6 = vcmp.gt.s32.totalorder %v1320_v19, 0  ;;  %vm435_vm7 = vcmp.gt.s32.totalorder %v1320_v19, 1  ;;  %vm513_vm8 = vcmp.gt.s32.totalorder %v1320_v19, 2 }
  0xe1   :  { %v157_v25 = vpack.c.bf16 %v150_v23, %v149_v22  ;;  %v1010_v26 = vpop.f32.mrb[4].mxu0  ;;  %vm591_vm9 = vcmp.gt.s32.totalorder %v1320_v19, 3  ;;  %vm669_vm10 = vcmp.gt.s32.totalorder %v1320_v19, 4  ;;  %vm747_vm11 = vcmp.gt.s32.totalorder %v1320_v19, 5 }
  0xe2   :  { %v143_v27 = vadd.f32 %v1010_v26, %v933_v11  ;;  %v134_v28 = vpop.f32.mrb[5].mxu0  ;;  %vm825_vm12 = vcmp.gt.s32.totalorder %v1320_v19, 6  ;;  %vm903_vm13 = vcmp.gt.s32.totalorder %v1320_v19, 7 }
  0xe3   :  { %1016 = vmatprep.mubr.msk.bf16.mxu1 %vm184_vm2, %v157_v25  ;;  %v135_v29 = vadd.f32 %v933_v11, %v134_v28  ;;  %v1011_v30 = vpop.f32.mrb[6].mxu0 }
  0xe4   :  { %1017 = vmatmul.mubr.msk.bf16.vlgmr.msra.gmra.mrb[0].mxu1 %vm184_vm2, %v158_v24  ;;  %v155_v31 = vmax.f32 %v143_v27, 0.0  ;;  %v146_v32 = vadd.f32 %v1011_v30, %v933_v11  ;;  %v137_v33 = vpop.f32.mrb[7].mxu0 }
  0xe5   :  { %v153_v34 = vmax.f32 %v135_v29, 0.0  ;;  %v138_v35 = vadd.f32 %v933_v11, %v137_v33  ;;  %1033 = vmatpush3.bf16.msra.mxu1 %v1244_v5 }
  0xe6   :  { %v156_v36 = vmax.f32 %v146_v32, 0.0  ;;  %1034 = vmatprep.subr.bf16.mxu1 %v1180_v4 }
  0xe7   :  { %v154_v37 = vmax.f32 %v138_v35, 0.0 }
  0xe8   :  { %v160_v38 = vpack.c.bf16 %v156_v36, %v155_v31 }
  0xe9   :  { %v159_v39 = vpack.c.bf16 %v154_v37, %v153_v34  ;;  %1035 = vmatpush3.bf16.msra.mxu1 %v1263_v9  ;;  %v326_v40 = vpop.f32.mrb[8].mxu0 }
  0xea   :  { %1048 = vmatprep.subr.bf16.mxu1 %v1180_v4  ;;  %v1030_v41 = vpop.f32.mrb[9].mxu0 }
  0xeb   :  { %1020 = vmatprep.mubr.msk.bf16.mxu1 %vm184_vm2, %v159_v39  ;;  %v329_v42 = vpop.f32.mrb[10].mxu0 }
  0xec   :  { %1021 = vmatmul.mubr.msk.bf16.gmra.mrb[4].mxu1 %vm184_vm2, %v160_v38  ;;  %v1031_v43 = vpop.f32.mrb[11].mxu0 }
  0xed   :  { %1036 = vmatprep.mubr.msk.bf16.mxu1 %vm1181_vm1, %v1180_v4 }
 0x1b7   :  { %v1018_v46 = vpop.f32.mrb[0].mxu1 }
 0x1b8   :  { %v1298_v47 = vadd.f32 %v1018_v46, %v943_v45  ;;  %v231_v48 = vpop.f32.mrb[1].mxu1 }
 0x1b9   :  { %v232_v49 = vadd.f32 %v943_v45, %v231_v48  ;;  %v1019_v50 = vpop.f32.mrb[2].mxu1 }
 0x1ba   :  { %v1300_v51 = vadd.f32 %v1019_v50, %v943_v45  ;;  %v234_v52 = vpop.f32.mrb[3].mxu1 }
 0x1bb   :  { %v332_v53 = vadd.f32 %v326_v40, %v232_v49  ;;  %v235_v54 = vadd.f32 %v943_v45, %v234_v52 }
 0x1bd   :  { %v952_v55 = vmul.f32 -1.442695, %v332_v53 }
 0x1bf   :  { %1106 = vpow2.f32 %v952_v55  ;;  %v1022_v60 = vpop.f32.mrb[4].mxu1 }
 0x1c0   :  { %v1302_v61 = vadd.f32 %v1022_v60, %v943_v45  ;;  %v247_v62 = vpop.f32.mrb[5].mxu1 }
 0x1c1   :  { %v1304_v63 = vadd.f32 %v943_v45, %v247_v62  ;;  %v1023_v0 = vpop.f32.mrb[6].mxu1 }
 0x1c2   :  { %v1306_v1 = vadd.f32 %v1023_v0, %v943_v45  ;;  %v250_v2 = vpop.f32.mrb[7].mxu1 }
 0x1c3   :  { %v1310_v7 = vadd.f32 %v943_v45, %v250_v2 }
 0x1c9   :  { %v1107_v57 = vpop.eup %1106 }
 0x1ca   :  { %v336_v58 = vadd.f32 1.0, %v1107_v57 }
 0x1cc   :  { %1108 = vrcp.f32 %v336_v58 }
 0x1d6   :  { %v1109_v8 = vpop.eup %1108 }
 0x1d7   :  { %v339_v11 = vmul.f32 %v1109_v8, %v1308_v6 }
 0x1d9   :  { %v340_v12 = vadd.f32 %v339_v11, %v1313_v10 }
 0x1db   :  { %343 = vrot.lane.b32.xlu0 %v340_v12, %s1184_s1  ;;  %v341_v15 = vmul.f32 0.0, %v340_v12 }
 0x24d   :  { %v344_v13 = vpop.permute.xlu0 %343 }
 0x24e   :  { %v346_v14 = vmul.f32 %v344_v13, %v340_v12 }
 0x250   :  { %348 = vrot.lane.b32.xlu0 %v346_v14, %s1185_s6 }
 0x2c2   :  { %v349_v16 = vpop.permute.xlu0 %348 }
 0x2c3   :  { %v351_v17 = vadd.f32 %v349_v16, %v341_v15 }
 0x2c5   :  { %1110 = vtanh.f32 %v351_v17  ;;  %v360_v38 = vsel %vm358_vm6, %v351_v17, 0.0 }
 0x2cf   :  { %v1111_v18 = vpop.eup %1110 }
 0x2d0   :  { %354 = vrot.lane.b32.xlu1 %v1111_v18, %s1184_s1 }
 0x342   :  { %v355_v20 = vpop.permute.xlu1 %354 }
 0x343   :  { %v357_v21 = vmul.f32 %v355_v20, %v340_v12 }
 0x345   :  { %v1325_v22 = vsel %vm358_vm6, %v357_v21, 0.0 }
 0x346   :  { %v362_v23 = vpack.c.bf16 %v1325_v22, %v1325_v22 }
 0x348   :  { %364 = vrot.lane.b32.xlu0 %v362_v23, %s1185_s6 }
 0x3ba   :  { %v365_v24 = vpop.permute.xlu0 %364 }
 0x3bb   :  { %1037 = vmatmul.mubr.msk.bf16.vlgmr.msra.gmra.mrb[8].mxu1 %vm184_vm2, %v365_v24 }
 0x3bc   :  { %1049 = vmatpush3.bf16.msra.mxu1 %v1244_v5  ;;  %1052 = vmatprep.mubr.msk.bf16.mxu1 %vm1181_vm1, %v1180_v4 }
 0x3bd   :  { %1050 = vmatprep.subr.bf16.mxu1 %v1180_v4 }
 0x3c0   :  { %1051 = vmatpush3.bf16.msra.mxu1 %v1263_v9 }
 0x3c1   :  { %1064 = vmatprep.subr.bf16.mxu1 %v1180_v4 }
 0x48e   :  { %v403_v25 = vpop.f32.mrb[8].mxu1 }
 0x48f   :  { %v409_v26 = vadd.f32 %v403_v25, %v235_v54  ;;  %v1038_v27 = vpop.f32.mrb[9].mxu1 }
 0x490   :  { %v406_v28 = vpop.f32.mrb[10].mxu1 }
 0x491   :  { %v954_v29 = vmul.f32 -1.442695, %v409_v26  ;;  %v1039_v30 = vpop.f32.mrb[11].mxu1 }
 0x493   :  { %1112 = vpow2.f32 %v954_v29 }
 0x49d   :  { %v1113_v31 = vpop.eup %1112 }
 0x49e   :  { %v413_v32 = vadd.f32 1.0, %v1113_v31 }
 0x4a0   :  { %1114 = vrcp.f32 %v413_v32 }
 0x4aa   :  { %v1115_v33 = vpop.eup %1114 }
 0x4ab   :  { %v416_v34 = vmul.f32 %v1115_v33, %v1308_v6 }
 0x4ad   :  { %v417_v35 = vadd.f32 %v416_v34, %v1313_v10 }
 0x4af   :  { %420 = vrot.lane.b32.xlu1 %v417_v35, %s1184_s1  ;;  %v418_v39 = vmul.f32 %v417_v35, %v360_v38 }
 0x521   :  { %v421_v36 = vpop.permute.xlu1 %420 }
 0x522   :  { %v423_v37 = vmul.f32 %v421_v36, %v417_v35 }
 0x524   :  { %425 = vrot.lane.b32.xlu0 %v423_v37, %s1185_s6 }
 0x596   :  { %v426_v40 = vpop.permute.xlu0 %425 }
 0x597   :  { %v428_v41 = vadd.f32 %v426_v40, %v418_v39 }
 0x599   :  { %1116 = vtanh.f32 %v428_v41 }
 0x5a3   :  { %v1117_v42 = vpop.eup %1116 }
 0x5a4   :  { %431 = vrot.lane.b32.xlu1 %v1117_v42, %s1184_s1 }
 0x616   :  { %v432_v43 = vpop.permute.xlu1 %431 }
 0x617   :  { %v434_v45 = vmul.f32 %v432_v43, %v417_v35 }
 0x619   :  { %v436_v46 = vsel %vm435_vm7, %v434_v45, %v1325_v22  ;;  %v438_v13 = vsel %vm435_vm7, %v434_v45, 0.0 }
 0x61a   :  { %v440_v48 = vpack.c.bf16 %v436_v46, %v436_v46  ;;  %v439_v16 = vadd.f32 %v438_v13, %v1325_v22 }
 0x61c   :  { %442 = vrot.lane.b32.xlu0 %v440_v48, %s1185_s6 }
 0x68e   :  { %v443_v49 = vpop.permute.xlu0 %442 }
 0x68f   :  { %1045 = vmatmul.mubr.msk.bf16.vlgmr.msra.gmra.mrb[12].mxu0 %vm184_vm2, %v443_v49 }
 0x690   :  { %1057 = vmatpush3.bf16.msra.mxu0 %v1244_v5  ;;  %1060 = vmatprep.mubr.msk.bf16.mxu0 %vm1181_vm1, %v1180_v4 }
 0x691   :  { %1058 = vmatprep.subr.bf16.mxu0 %v1180_v4 }
 0x694   :  { %1059 = vmatpush3.bf16.msra.mxu0 %v1263_v9 }
 0x695   :  { %1072 = vmatprep.subr.bf16.mxu0 %v1180_v4 }
 0x762   :  { %v481_v50 = vpop.f32.mrb[12].mxu0 }
 0x763   :  { %v487_v52 = vadd.f32 %v481_v50, %v1298_v47  ;;  %v1046_v53 = vpop.f32.mrb[13].mxu0  ;;  %v437_v47 = vsel %vm435_vm7, %v428_v41, %v360_v38 }
 0x764   :  { %v484_v54 = vpop.f32.mrb[14].mxu0 }
 0x765   :  { %v956_v55 = vmul.f32 -1.442695, %v487_v52  ;;  %v1047_v56 = vpop.f32.mrb[15].mxu0 }
 0x767   :  { %1118 = vpow2.f32 %v956_v55 }
 0x771   :  { %v1119_v57 = vpop.eup %1118 }
 0x772   :  { %v491_v58 = vadd.f32 1.0, %v1119_v57 }
 0x774   :  { %1120 = vrcp.f32 %v491_v58 }
 0x77e   :  { %v1121_v59 = vpop.eup %1120 }
 0x77f   :  { %v494_v60 = vmul.f32 %v1121_v59, %v1308_v6 }
 0x781   :  { %v495_v62 = vadd.f32 %v494_v60, %v1313_v10 }
 0x783   :  { %498 = vrot.lane.b32.xlu1 %v495_v62, %s1184_s1  ;;  %v496_v3 = vmul.f32 %v495_v62, %v437_v47 }
 0x7f5   :  { %v499_v0 = vpop.permute.xlu1 %498 }
 0x7f6   :  { %v501_v2 = vmul.f32 %v499_v0, %v495_v62 }
 0x7f8   :  { %503 = vrot.lane.b32.xlu0 %v501_v2, %s1185_s6 }
 0x86a   :  { %v504_v8 = vpop.permute.xlu0 %503 }
 0x86b   :  { %v506_v11 = vadd.f32 %v504_v8, %v496_v3 }
 0x86d   :  { %1122 = vtanh.f32 %v506_v11 }
 0x877   :  { %v1123_v12 = vpop.eup %1122 }
 0x878   :  { %509 = vrot.lane.b32.xlu1 %v1123_v12, %s1184_s1 }
 0x8ea   :  { %v510_v14 = vpop.permute.xlu1 %509 }
 0x8eb   :  { %v512_v15 = vmul.f32 %v510_v14, %v495_v62 }
 0x8ed   :  { %v516_v17 = vsel %vm513_vm8, %v512_v15, 0.0  ;;  %v514_v18 = vsel %vm513_vm8, %v512_v15, %v436_v46 }
 0x8ee   :  { %v517_v20 = vadd.f32 %v516_v17, %v439_v16  ;;  %v518_v21 = vpack.c.bf16 %v514_v18, %v514_v18 }
 0x8f0   :  { %520 = vrot.lane.b32.xlu0 %v518_v21, %s1185_s6 }
 0x962   :  { %v521_v23 = vpop.permute.xlu0 %520 }
 0x963   :  { %1053 = vmatmul.mubr.msk.bf16.vlgmr.msra.gmra.mrb[12].mxu1 %vm184_vm2, %v521_v23 }
 0x964   :  { %1065 = vmatpush3.bf16.msra.mxu1 %v1244_v5  ;;  %1068 = vmatprep.mubr.msk.bf16.mxu1 %vm1181_vm1, %v1180_v4 }
 0x965   :  { %1066 = vmatprep.subr.bf16.mxu1 %v1180_v4 }
 0x968   :  { %1067 = vmatpush3.bf16.msra.mxu1 %v1263_v9 }
 0x969   :  { %1080 = vmatprep.subr.bf16.mxu1 %v1180_v4 }
 0xa36   :  { %v559_v22 = vpop.f32.mrb[12].mxu1 }
 0xa37   :  { %v565_v24 = vadd.f32 %v559_v22, %v1300_v51  ;;  %v1054_v25 = vpop.f32.mrb[13].mxu1  ;;  %v515_v51 = vsel %vm513_vm8, %v506_v11, %v437_v47 }
 0xa38   :  { %v562_v26 = vpop.f32.mrb[14].mxu1 }
 0xa39   :  { %v958_v27 = vmul.f32 -1.442695, %v565_v24  ;;  %v1055_v28 = vpop.f32.mrb[15].mxu1 }
 0xa3b   :  { %1124 = vpow2.f32 %v958_v27 }
 0xa45   :  { %v1125_v29 = vpop.eup %1124 }
 0xa46   :  { %v569_v30 = vadd.f32 1.0, %v1125_v29 }
 0xa48   :  { %1126 = vrcp.f32 %v569_v30 }
 0xa52   :  { %v1127_v31 = vpop.eup %1126 }
 0xa53   :  { %v572_v32 = vmul.f32 %v1127_v31, %v1308_v6 }
 0xa55   :  { %v573_v33 = vadd.f32 %v572_v32, %v1313_v10 }
 0xa57   :  { %576 = vrot.lane.b32.xlu1 %v573_v33, %s1184_s1  ;;  %v574_v36 = vmul.f32 %v573_v33, %v515_v51 }
 0xac9   :  { %v577_v34 = vpop.permute.xlu1 %576 }
 0xaca   :  { %v579_v35 = vmul.f32 %v577_v34, %v573_v33 }
 0xacc   :  { %581 = vrot.lane.b32.xlu0 %v579_v35, %s1185_s6 }
 0xb3e   :  { %v582_v37 = vpop.permute.xlu0 %581 }
 0xb3f   :  { %v584_v38 = vadd.f32 %v582_v37, %v574_v36 }
 0xb41   :  { %1128 = vtanh.f32 %v584_v38 }
 0xb4b   :  { %v1129_v39 = vpop.eup %1128 }
 0xb4c   :  { %587 = vrot.lane.b32.xlu1 %v1129_v39, %s1184_s1 }
 0xbbe   :  { %v588_v40 = vpop.permute.xlu1 %587 }
 0xbbf   :  { %v590_v41 = vmul.f32 %v588_v40, %v573_v33 }
 0xbc1   :  { %v594_v42 = vsel %vm591_vm9, %v590_v41, 0.0  ;;  %v592_v43 = vsel %vm591_vm9, %v590_v41, %v514_v18 }
 0xbc2   :  { %v595_v45 = vadd.f32 %v594_v42, %v517_v20  ;;  %v596_v46 = vpack.c.bf16 %v592_v43, %v592_v43 }
 0xbc4   :  { %598 = vrot.lane.b32.xlu0 %v596_v46, %s1185_s6 }
 0xc36   :  { %v599_v48 = vpop.permute.xlu0 %598 }
 0xc37   :  { %1061 = vmatmul.mubr.msk.bf16.vlgmr.msra.gmra.mrb[16].mxu0 %vm184_vm2, %v599_v48 }
 0xc38   :  { %1073 = vmatpush3.bf16.msra.mxu0 %v1244_v5  ;;  %1076 = vmatprep.mubr.msk.bf16.mxu0 %vm1181_vm1, %v1180_v4 }
 0xc39   :  { %1074 = vmatprep.subr.bf16.mxu0 %v1180_v4 }
 0xc3c   :  { %1075 = vmatpush3.bf16.msra.mxu0 %v1263_v9 }
 0xd0a   :  { %v637_v49 = vpop.f32.mrb[16].mxu0 }
 0xd0b   :  { %v643_v50 = vadd.f32 %v637_v49, %v1304_v63  ;;  %v1062_v52 = vpop.f32.mrb[17].mxu0  ;;  %v593_v63 = vsel %vm591_vm9, %v584_v38, %v515_v51 }
 0xd0c   :  { %v640_v53 = vpop.f32.mrb[18].mxu0 }
 0xd0d   :  { %v960_v54 = vmul.f32 -1.442695, %v643_v50  ;;  %v1063_v55 = vpop.f32.mrb[19].mxu0 }
 0xd0f   :  { %1130 = vpow2.f32 %v960_v54 }
 0xd19   :  { %v1131_v56 = vpop.eup %1130 }
 0xd1a   :  { %v647_v57 = vadd.f32 1.0, %v1131_v56 }
 0xd1c   :  { %1132 = vrcp.f32 %v647_v57 }
 0xd26   :  { %v1133_v58 = vpop.eup %1132 }
 0xd27   :  { %v650_v59 = vmul.f32 %v1133_v58, %v1308_v6 }
 0xd29   :  { %v651_v60 = vadd.f32 %v650_v59, %v1313_v10 }
 0xd2b   :  { %654 = vrot.lane.b32.xlu1 %v651_v60, %s1184_s1  ;;  %v652_v2 = vmul.f32 %v651_v60, %v593_v63 }
 0xd9d   :  { %v655_v62 = vpop.permute.xlu1 %654 }
 0xd9e   :  { %v657_v0 = vmul.f32 %v655_v62, %v651_v60 }
 0xda0   :  { %659 = vrot.lane.b32.xlu0 %v657_v0, %s1185_s6 }
 0xe12   :  { %v660_v47 = vpop.permute.xlu0 %659 }
 0xe13   :  { %v662_v3 = vadd.f32 %v660_v47, %v652_v2 }
 0xe15   :  { %1134 = vtanh.f32 %v662_v3 }
 0xe1f   :  { %v1135_v8 = vpop.eup %1134 }
 0xe20   :  { %665 = vrot.lane.b32.xlu1 %v1135_v8, %s1184_s1 }
 0xe92   :  { %v666_v11 = vpop.permute.xlu1 %665 }
 0xe93   :  { %v668_v12 = vmul.f32 %v666_v11, %v651_v60 }
 0xe95   :  { %v672_v13 = vsel %vm669_vm10, %v668_v12, 0.0  ;;  %v670_v14 = vsel %vm669_vm10, %v668_v12, %v592_v43 }
 0xe96   :  { %v673_v15 = vadd.f32 %v672_v13, %v595_v45  ;;  %v674_v16 = vpack.c.bf16 %v670_v14, %v670_v14 }
 0xe98   :  { %676 = vrot.lane.b32.xlu0 %v674_v16, %s1185_s6 }
 0xf0a   :  { %v677_v17 = vpop.permute.xlu0 %676 }
 0xf0b   :  { %1069 = vmatmul.mubr.msk.bf16.vlgmr.msra.gmra.mrb[16].mxu1 %vm184_vm2, %v677_v17 }
 0xf0c   :  { %1081 = vmatpush3.bf16.msra.mxu1 %v1244_v5  ;;  %1084 = vmatprep.mubr.msk.bf16.mxu1 %vm1181_vm1, %v1180_v4 }
 0xf0d   :  { %1082 = vmatprep.subr.bf16.mxu1 %v1180_v4 }
 0xf10   :  { %1083 = vmatpush3.bf16.msra.mxu1 %v1263_v9 }
 0xfde   :  { %v715_v18 = vpop.f32.mrb[16].mxu1 }
 0xfdf   :  { %v721_v20 = vadd.f32 %v715_v18, %v1310_v7  ;;  %v1070_v21 = vpop.f32.mrb[17].mxu1  ;;  %v671_v7 = vsel %vm669_vm10, %v662_v3, %v593_v63 }
 0xfe0   :  { %v718_v23 = vpop.f32.mrb[18].mxu1  ;;  %v906_v21 = vcvt.s32.f32 %v1292_v44 }
 0xfe1   :  { %v962_v22 = vmul.f32 -1.442695, %v721_v20  ;;  %v1071_v24 = vpop.f32.mrb[19].mxu1 }
 0xfe3   :  { %1136 = vpow2.f32 %v962_v22 }
 0xfed   :  { %v1137_v25 = vpop.eup %1136 }
 0xfee   :  { %v725_v26 = vadd.f32 1.0, %v1137_v25 }
 0xff0   :  { %1138 = vrcp.f32 %v725_v26 }
 0xffa   :  { %v1139_v27 = vpop.eup %1138 }
 0xffb   :  { %v728_v5 = vmul.f32 %v1139_v27, %v1308_v6 }
 0xffd   :  { %v729_v28 = vadd.f32 %v728_v5, %v1313_v10 }
 0xfff   :  { %732 = vrot.lane.b32.xlu1 %v729_v28, %s1184_s1  ;;  %v730_v29 = vmul.f32 %v729_v28, %v671_v7 }
0x1071   :  { %v733_v4 = vpop.permute.xlu1 %732 }
0x1072   :  { %v735_v9 = vmul.f32 %v733_v4, %v729_v28 }
0x1074   :  { %737 = vrot.lane.b32.xlu0 %v735_v9, %s1185_s6 }
0x10e6   :  { %v738_v30 = vpop.permute.xlu0 %737 }
0x10e7   :  { %v740_v31 = vadd.f32 %v738_v30, %v730_v29 }
0x10e9   :  { %1140 = vtanh.f32 %v740_v31 }
0x10f3   :  { %v1141_v32 = vpop.eup %1140 }
0x10f4   :  { %743 = vrot.lane.b32.xlu1 %v1141_v32, %s1184_s1 }
0x1166   :  { %v744_v33 = vpop.permute.xlu1 %743 }
0x1167   :  { %v746_v34 = vmul.f32 %v744_v33, %v729_v28 }
0x1169   :  { %v750_v35 = vsel %vm747_vm11, %v746_v34, 0.0  ;;  %v748_v51 = vsel %vm747_vm11, %v746_v34, %v670_v14 }
0x116a   :  { %v751_v36 = vadd.f32 %v750_v35, %v673_v15  ;;  %v752_v37 = vpack.c.bf16 %v748_v51, %v748_v51 }
0x116c   :  { %754 = vrot.lane.b32.xlu0 %v752_v37, %s1185_s6 }
0x11de   :  { %v755_v38 = vpop.permute.xlu0 %754 }
0x11df   :  { %1077 = vmatmul.mubr.msk.bf16.vlgmr.msra.gmra.mrb[20].mxu0 %vm184_vm2, %v755_v38 }
0x12b2   :  { %v793_v39 = vpop.f32.mrb[20].mxu0 }
0x12b3   :  { %v799_v40 = vadd.f32 %v793_v39, %v1302_v61  ;;  %v1078_v41 = vpop.f32.mrb[21].mxu0  ;;  %v749_v61 = vsel %vm747_vm11, %v740_v31, %v671_v7 }
0x12b4   :  { %v796_v42 = vpop.f32.mrb[22].mxu0 }
0x12b5   :  { %v964_v43 = vmul.f32 -1.442695, %v799_v40  ;;  %v1079_v45 = vpop.f32.mrb[23].mxu0 }
0x12b7   :  { %1142 = vpow2.f32 %v964_v43 }
0x12c1   :  { %v1143_v46 = vpop.eup %1142 }
0x12c2   :  { %v803_v48 = vadd.f32 1.0, %v1143_v46 }
0x12c4   :  { %1144 = vrcp.f32 %v803_v48 }
0x12ce   :  { %v1145_v49 = vpop.eup %1144 }
0x12cf   :  { %v806_v50 = vmul.f32 %v1145_v49, %v1308_v6 }
0x12d1   :  { %v807_v52 = vadd.f32 %v806_v50, %v1313_v10 }
0x12d3   :  { %810 = vrot.lane.b32.xlu1 %v807_v52, %s1184_s1  ;;  %v808_v55 = vmul.f32 %v807_v52, %v749_v61 }
0x1345   :  { %v811_v53 = vpop.permute.xlu1 %810 }
0x1346   :  { %v813_v54 = vmul.f32 %v811_v53, %v807_v52 }
0x1348   :  { %815 = vrot.lane.b32.xlu0 %v813_v54, %s1185_s6 }
0x13ba   :  { %v816_v56 = vpop.permute.xlu0 %815 }
0x13bb   :  { %v818_v57 = vadd.f32 %v816_v56, %v808_v55 }
0x13bd   :  { %1146 = vtanh.f32 %v818_v57  ;;  %v827_v22 = vsel %vm825_vm12, %v818_v57, %v749_v61 }
0x13c7   :  { %v1147_v58 = vpop.eup %1146 }
0x13c8   :  { %821 = vrot.lane.b32.xlu1 %v1147_v58, %s1184_s1 }
0x143a   :  { %v822_v59 = vpop.permute.xlu1 %821 }
0x143b   :  { %v824_v60 = vmul.f32 %v822_v59, %v807_v52 }
0x143d   :  { %v828_v62 = vsel %vm825_vm12, %v824_v60, 0.0  ;;  %v826_v0 = vsel %vm825_vm12, %v824_v60, %v748_v51 }
0x143e   :  { %v829_v63 = vadd.f32 %v828_v62, %v751_v36  ;;  %v830_v2 = vpack.c.bf16 %v826_v0, %v826_v0 }
0x1440   :  { %832 = vrot.lane.b32.xlu0 %v830_v2, %s1185_s6 }
0x14b2   :  { %v833_v47 = vpop.permute.xlu0 %832 }
0x14b3   :  { %1085 = vmatmul.mubr.msk.bf16.vlgmr.msra.gmra.mrb[20].mxu1 %vm184_vm2, %v833_v47 }
0x1586   :  { %v871_v3 = vpop.f32.mrb[20].mxu1 }
0x1587   :  { %v877_v8 = vadd.f32 %v871_v3, %v1306_v1  ;;  %v1086_v11 = vpop.f32.mrb[21].mxu1 }
0x1588   :  { %v874_v12 = vpop.f32.mrb[22].mxu1 }
0x1589   :  { %v966_v13 = vmul.f32 -1.442695, %v877_v8  ;;  %v1087_v14 = vpop.f32.mrb[23].mxu1 }
0x158b   :  { %1148 = vpow2.f32 %v966_v13 }
0x1595   :  { %v1149_v15 = vpop.eup %1148 }
0x1596   :  { %v881_v16 = vadd.f32 1.0, %v1149_v15 }
0x1598   :  { %1150 = vrcp.f32 %v881_v16 }
0x15a2   :  { %v1151_v17 = vpop.eup %1150 }
0x15a3   :  { %v884_v18 = vmul.f32 %v1151_v17, %v1308_v6 }
0x15a5   :  { %v885_v20 = vadd.f32 %v884_v18, %v1313_v10 }
0x15a7   :  { %888 = vrot.lane.b32.xlu1 %v885_v20, %s1184_s1  ;;  %v886_v24 = vmul.f32 %v885_v20, %v827_v22 }
0x15ab   :  { %909 = vperm.xlu1 %1095, %v906_v21  }
0x1619   :  { %v889_v23 = vpop.permute.xlu1 %888 }
0x161a   :  { %v891_v1 = vmul.f32 %v889_v23, %v885_v20 }
0x161c   :  { %893 = vrot.lane.b32.xlu0 %v891_v1, %s1185_s6 }
0x162a   :  { %v910_v6 = vpop.permute.xlu1 %909 }
0x168e   :  { %v894_v25 = vpop.permute.xlu0 %893 }
0x168f   :  { %v896_v26 = vadd.f32 %v894_v25, %v886_v24 }
0x1691   :  { %1152 = vtanh.f32 %v896_v26 }
0x1692   :  { %1154 = vrcp.f32 %v910_v6 }
0x169b   :  { %v1153_v27 = vpop.eup %1152 }
0x169c   :  { %899 = vrot.lane.b32.xlu0 %v1153_v27, %s1184_s1  ;;  %v1155_v4 = vpop.eup %1154 }
0x170e   :  { %v900_v44 = vpop.permute.xlu0 %899 }
0x170f   :  { %v902_v10 = vmul.f32 %v900_v44, %v885_v20 }
0x1711   :  { %v904_v5 = vsel %vm903_vm13, %v902_v10, 0.0 }
0x1712   :  { %v905_v28 = vadd.f32 %v904_v5, %v829_v63 }
0x1714   :  { %v913_v9 = vmul.f32 %v1155_v4, %v905_v28 }
0x1716   :  { %915 = vrot.lane.b32.xlu1 %v913_v9, %s1185_s6 }
0x1788   :  { %v916_v7 = vpop.permute.xlu1 %915 }
0x1789   :  { %918 = vst.msk [vmem:[#allocation2] sm:$0xff] %vm184_vm2, %v916_v7 }
0x178a   :  { %1167 = shalt.err (!%p1164_p4)
}
0x178b   :  { %s1168_s25 = scalar_lea.hbm %s1481_s7, 128 }
0x178c   :  { %p1169_p5 = scmp.ne.s32.totalorder %s1481_s7, %s1168_s25  ;;  %p1172_p6 = scmp.lt.u32.totalorder %s1168_s25, %s1481_s7 }
0x178e   :  { %p1174_p7 = pnand %p1172_p6, %p1169_p5 }
0x1790   :  { %1177 = shalt.err (!%p1174_p7)
}
0x1791   :  { %928 = dma.vmem_to_hbm [thread:$0]  %s926_s21, 128, %s1481_s7, [#allocation3]  }
0x1792   :  { %1178 = dma.done.wait [#allocation3], 128  }
0x1793   :  { %1179 = vsyncadd [#allocation3], 4294967168 }
0x1794   :  { %932 = vsyncpa [#allocation3], 1 }

</bundles_post_ra>
